<compile_context>
chip_gen: v5e
topology: v5e:2x2
jax: 0.10.0
libtpu: 0.0.40
codegen_flags: <defaults>
</compile_context>

<pallas_src>
import math

import jax
import jax.numpy as jnp
from jax.experimental import pallas as pl
from jax.experimental.pallas import tpu as pltpu


def make_pos_encoding(emb_size: int, max_len: int,
                      dtype=jnp.float32) -> jnp.ndarray:
    """Deterministic sinusoidal table, shape (max_len, 1, emb_size).

    Mirrors the PyTorch __init__:
      pe[:, 0::2] = sin(pos * denom);  pe[:, 1::2] = cos(pos * denom)
    (Assumes emb_size is even, same as the original module.)
    """
    positions = jnp.arange(max_len, dtype=jnp.float32)[:, None]          # (S, 1)
    denominator = jnp.exp(
        -math.log(10000.0)
        * jnp.arange(0, emb_size, 2, dtype=jnp.float32)
        / emb_size
    )                                                                    # (E/2,)
    angles = positions * denominator                                     # (S, E/2)
    pe = jnp.zeros((max_len, emb_size), dtype=jnp.float32)
    pe = pe.at[:, 0::2].set(jnp.sin(angles))
    pe = pe.at[:, 1::2].set(jnp.cos(angles))
    return pe[:, None, :].astype(dtype)                                  # (S, 1, E)


def _add_pe_kernel(x_ref, pe_ref, o_ref):
    # Elementwise add.  On the 3-D path the PE block is (TS, 1, E) and
    # broadcasts over the batch (sublane) axis in-kernel; on the folded 2-D
    # path shapes match exactly.  Dtype promotion (e.g. bf16 + f32) happens
    # here on the VPU; the final cast targets the (PyTorch-style promoted)
    # output dtype.
    o_ref[...] = (x_ref[...] + pe_ref[...]).astype(o_ref.dtype)


def _vmem_budget():
    """(tile working-set budget bytes, vmem_limit_bytes) per TPU generation."""
    try:
        cap = pltpu.get_tpu_info().vmem_capacity_bytes
    except Exception:
        cap = 64 << 20                      # be conservative (v7x-class)
    if cap <= (64 << 20):                   # v7x: 64 MiB VMEM per TensorCore
        return 24 << 20, 56 << 20
    return 48 << 20, 100 << 20              # v5e / v6e: 128 MiB VMEM


def _choose_ts(S, bytes_per_row_x, bytes_per_row_out, bytes_per_row_pe,
               budget_bytes):
    """Rows of x (sequence positions) per grid step.

    Working set ~= 2 double-buffered x tiles + 2 out tiles + 2 PE tiles.
    """
    per_row = 2 * bytes_per_row_x + 2 * bytes_per_row_out + 2 * bytes_per_row_pe
    ts = max(8, budget_bytes // max(per_row, 1))
    ts = (ts // 8) * 8
    if S >= 16:
        # Cap so the (parallel) grid keeps >= 2 steps — lets both v7x
        # TensorCores stream HBM concurrently.
        half = (((S + 1) // 2) + 7) // 8 * 8
        ts = min(ts, half)
    if ts >= S:
        ts = S                               # single full-extent block
    return int(ts)


def positional_encoding_forward(token_embedding: jnp.ndarray,
                                pos_encoding: jnp.ndarray,
                                *,
                                in_place: bool = False) -> jnp.ndarray:
    """token_embedding: (S, B, E); pos_encoding: (max_len, 1, E), max_len >= S."""
    S, B, E = token_embedding.shape
    assert pos_encoding.shape[0] >= S and pos_encoding.shape[2] == E

    x_dtype = token_embedding.dtype
    pe_dtype = pos_encoding.dtype
    # PyTorch promotion semantics: token_embedding + pos_encoding buffer.
    out_dtype = jnp.result_type(x_dtype, pe_dtype)

    x_row = B * E * jnp.dtype(x_dtype).itemsize
    out_row = B * E * jnp.dtype(out_dtype).itemsize
    pe_row3 = E * jnp.dtype(pe_dtype).itemsize

    budget_bytes, vmem_limit = _vmem_budget()
    io_alias = {0: 0} if (in_place and out_dtype == x_dtype) else {}

    if E % 128 == 0:
        # ---- 3-D path: E is already lane-dense; broadcast PE over B in-kernel,
        # so only ~S*E PE bytes are read from HBM.  The full (max_len, 1, E)
        # table is passed straight through — the index_map only touches the
        # first ceil(S/ts) blocks, so no wrapper-side slice/copy is needed.
        ts = _choose_ts(S, x_row, out_row, pe_row3, budget_bytes)
        grid = (pl.cdiv(S, ts),)
        cost = pl.CostEstimate(
            flops=S * B * E, transcendentals=0,
            bytes_accessed=S * (x_row + out_row + pe_row3))
        return pl.pallas_call(
            _add_pe_kernel,
            out_shape=jax.ShapeDtypeStruct((S, B, E), out_dtype),
            grid_spec=pltpu.PrefetchScalarGridSpec(
                num_scalar_prefetch=0,
                grid=grid,
                in_specs=[
                    pl.BlockSpec((ts, B, E), lambda s: (s, 0, 0)),
                    pl.BlockSpec((ts, 1, E), lambda s: (s, 0, 0)),
                ],
                out_specs=pl.BlockSpec((ts, B, E), lambda s: (s, 0, 0)),
            ),
            compiler_params=pltpu.CompilerParams(
                dimension_semantics=("parallel",),
                vmem_limit_bytes=vmem_limit,
            ),
            input_output_aliases=io_alias,
            cost_estimate=cost,
        )(token_embedding, pos_encoding)

    # ---- Folded 2-D path (E not a multiple of 128): fold B into the lane axis
    # so the output last dim is full-extent (unmasked stores).  PE is pre-tiled
    # over B in the wrapper (extra ~S*B*E PE read — acceptable for small E,
    # which is the only case that reaches this path).
    x2 = token_embedding.reshape(S, B * E)
    pe2 = jnp.broadcast_to(pos_encoding[:S], (S, B, E)).reshape(S, B * E)
    pe_row2 = B * E * jnp.dtype(pe_dtype).itemsize

    ts = _choose_ts(S, x_row, out_row, pe_row2, budget_bytes)
    grid = (pl.cdiv(S, ts),)
    cost = pl.CostEstimate(
        flops=S * B * E, transcendentals=0,
        bytes_accessed=S * (x_row + out_row + pe_row2))
    out2 = pl.pallas_call(
        _add_pe_kernel,
        out_shape=jax.ShapeDtypeStruct((S, B * E), out_dtype),
        grid_spec=pltpu.PrefetchScalarGridSpec(
            num_scalar_prefetch=0,
            grid=grid,
            in_specs=[
                pl.BlockSpec((ts, B * E), lambda s: (s, 0)),
                pl.BlockSpec((ts, B * E), lambda s: (s, 0)),
            ],
            out_specs=pl.BlockSpec((ts, B * E), lambda s: (s, 0)),
        ),
        compiler_params=pltpu.CompilerParams(
            dimension_semantics=("parallel",),
            vmem_limit_bytes=vmem_limit,
        ),
        input_output_aliases=io_alias,
        cost_estimate=cost,
    )(x2, pe2)
    return out2.reshape(S, B, E)


if __name__ == "__main__":
    key = jax.random.PRNGKey(0)
    k1, k2, k3 = jax.random.split(key, 3)

    # --- Test 1: small E (not a multiple of 128) → folded lane-dense path.
    S, B, E = 8, 2, 32
    MAX_LEN = 16
    x1 = jax.random.normal(k1, (S, B, E), dtype=jnp.float32)
    pe1 = make_pos_encoding(emb_size=E, max_len=MAX_LEN)
    out1 = jax.block_until_ready(positional_encoding_forward(x1, pe1))
    ref1 = x1 + pe1[:S]
    assert out1.shape == (S, B, E) and out1.dtype == jnp.float32
    assert jnp.allclose(out1, ref1, atol=1e-6), "mismatch vs reference (fold path)"

    # --- Test 2: E multiple of 128 → 3-D lane-dense path with in-kernel broadcast.
    S2, B2, E2 = 16, 2, 128
    MAX_LEN2 = 32
    x2 = jax.random.normal(k2, (S2, B2, E2), dtype=jnp.float32)
    pe2 = make_pos_encoding(emb_size=E2, max_len=MAX_LEN2)
    out2 = jax.block_until_ready(positional_encoding_forward(x2, pe2))
    ref2 = x2 + pe2[:S2]
    assert out2.shape == (S2, B2, E2) and out2.dtype == jnp.float32
    assert jnp.allclose(out2, ref2, atol=1e-6), "mismatch vs reference (3-D path)"

    # --- Test 3: mixed dtype (bf16 embedding + f32 buffer) promotes to f32,
    # matching the PyTorch module's behaviour.
    S3, B3, E3 = 8, 2, 128
    x3 = jax.random.normal(k3, (S3, B3, E3), dtype=jnp.float32).astype(jnp.bfloat16)
    pe3 = make_pos_encoding(emb_size=E3, max_len=16)
    out3 = jax.block_until_ready(positional_encoding_forward(x3, pe3))
    ref3 = x3.astype(jnp.float32) + pe3[:S3]
    assert out3.shape == (S3, B3, E3) and out3.dtype == jnp.float32
    assert jnp.allclose(out3, ref3, atol=1e-6), "mismatch vs reference (mixed dtype)"

    print("KERNEL_OK")
</pallas_src>

<mosaic_0001>
module attributes {stable_mosaic.version = 11 : i64} {
  func.func @_add_pe_kernel(%arg0: i32, %arg1: memref<8x64xf32, #tpu.memory_space<vmem>>, %arg2: memref<8x64xf32, #tpu.memory_space<vmem>>, %arg3: memref<8x64xf32, #tpu.memory_space<vmem>>) attributes {dimension_semantics = [#tpu.dimension_semantics<parallel>], iteration_bounds = array<i64: 1>, scalar_prefetch = 0 : i64, scratch_operands = 0 : i64, tpu.core_type = #tpu.core_type<tc>, window_params = [{transform_indices = @transform_0, window_bounds = array<i64: 8, 64>}, {transform_indices = @transform_1, window_bounds = array<i64: 8, 64>}, {transform_indices = @transform_2, window_bounds = array<i64: 8, 64>}]} {
    %c0 = arith.constant 0 : index
    %c0_0 = arith.constant 0 : index
    %0 = vector.load %arg1[%c0, %c0_0] : memref<8x64xf32, #tpu.memory_space<vmem>>, vector<8x64xf32>
    %c0_1 = arith.constant 0 : index
    %c0_2 = arith.constant 0 : index
    %1 = vector.load %arg2[%c0_1, %c0_2] : memref<8x64xf32, #tpu.memory_space<vmem>>, vector<8x64xf32>
    %2 = arith.addf %0, %1 : vector<8x64xf32>
    %c0_3 = arith.constant 0 : index
    %c0_4 = arith.constant 0 : index
    %3 = vector.load %arg3[%c0_3, %c0_4] : memref<8x64xf32, #tpu.memory_space<vmem>>, vector<8x64xf32>
    tpu.vector_store %arg3[%c0_3, %c0_4], %2 {strides = array<i32>} : memref<8x64xf32, #tpu.memory_space<vmem>>, vector<8x64xf32>,
    return
  }
  func.func @transform_0(%arg0: i32) -> (i32, i32) {
    %c0_i32 = arith.constant 0 : i32
    %c0_i32_0 = arith.constant 0 : i32
    return %arg0, %c0_i32 : i32, i32
  }
  func.func @transform_1(%arg0: i32) -> (i32, i32) {
    %c0_i32 = arith.constant 0 : i32
    %c0_i32_0 = arith.constant 0 : i32
    return %arg0, %c0_i32 : i32, i32
  }
  func.func @transform_2(%arg0: i32) -> (i32, i32) {
    %c0_i32 = arith.constant 0 : i32
    %c0_i32_0 = arith.constant 0 : i32
    return %arg0, %c0_i32 : i32, i32
  }
}

</mosaic_0001>

<bundles_post_ra>
// kernel: tpu_custom_call.1
= control target key start
LH: loop header
LB: loop body
LE: loop exit
PB: predicated region body
PF: predicated region fallthrough
CT: control target
= control target key end

     0   :  { %7 = vsyncpa [#allocation3], 0  ;;  %s171_s0 = inlined_call_operand.hbm [shape: f32[8,64], index: 0, kind: input, shape index: {}]   ;;  %s172_s1 = inlined_call_operand.hbm [shape: f32[8,64], index: 1, kind: input, shape index: {}]   ;;  %s173_s2 = inlined_call_operand.hbm [shape: f32[8,64], index: 2, kind: output, shape index: {}]  }
   0x1   :  { %8 = vsyncpa [#allocation6], 0 }
   0x2   :  { %9 = vsyncpa [#allocation4], 0  ;;  %s15_s11 = sshll.u32 %s171_s0, 4  ;;  %s144_s12 = smov [#allocation2]   ;;  %s16_s11 = int_to_ptr.hbm [resolvable:$true] %s15_s11 }
   0x3   :  { %s17_s13 = sshll.u32 %s144_s12, 4  ;;  %s26_s16 = sshll.u32 %s172_s1, 4  ;;  %s18_s13 = int_to_ptr.vmem [resolvable:$true] %s17_s13  ;;  %s27_s16 = int_to_ptr.hbm [resolvable:$true] %s26_s16 }
   0x4   :  { %20 = dma.hbm_to_vmem [thread:$0]  %s16_s11, 128, %s18_s13, [#allocation3]  }
   0x5   :  { %s145_s17 = smov [#allocation5]  }
   0x6   :  { %s28_s18 = sshll.u32 %s145_s17, 4  ;;  %s29_s18 = int_to_ptr.vmem [resolvable:$true] %s28_s18 }
   0x7   :  { %31 = dma.hbm_to_vmem [thread:$0]  %s27_s16, 128, %s29_s18, [#allocation6]  }
   0x8   :  { %138 = dma.done.wait [#allocation3], 128  }
   0x9   :  { %139 = vsyncadd [#allocation3], 4294967168 }
   0xa   :  { %140 = dma.done.wait [#allocation6], 128  }
   0xb   :  { %141 = vsyncadd [#allocation6], 4294967168  ;;  %s146_s19 = smov [#allocation7]   ;;  %s52_s22 = sshll.u32 %s173_s2, 4  ;;  %v40_v0 = vld [vmem:[#allocation2] sm:$0xff]  ;;  %v41_v1 = vld [vmem:[#allocation5] sm:$0xff]  ;;  %s53_s22 = int_to_ptr.hbm [resolvable:$true] %s52_s22 }
   0xc   :  { %s50_s0 = sshll.u32 %s146_s19, 4  ;;  %vm43_vm0 = vcmask 523264   ;;  %v42_v2 = vadd.f32 %v41_v1, %v40_v0  ;;  %s51_s0 = int_to_ptr.vmem [resolvable:$true] %s50_s0 }
   0xe   :  { %44 = vst.msk [vmem:[#allocation7] sm:$0xff] %vm43_vm0, %v42_v2 }
   0xf   :  { %55 = dma.vmem_to_hbm [thread:$0]  %s51_s0, 128, %s53_s22, [#allocation4]  }
  0x10   :  { %142 = dma.done.wait [#allocation4], 128  }
  0x11   :  { %143 = vsyncadd [#allocation4], 4294967168 }
  0x12   :  { %60 = vsyncpa [#allocation3], 1 }
  0x13   :  { %61 = vsyncpa [#allocation6], 1 }
  0x14   :  { %62 = vsyncpa [#allocation4], 1 }

</bundles_post_ra>
